<compile_context>
chip_gen: v6e
topology: v6e:2x2x1
jax: 0.10.0
libtpu: 0.0.40
codegen_flags: <defaults>
</compile_context>

<pallas_src>
import functools

import jax
import jax.numpy as jnp
from jax.experimental import pallas as pl
from jax.experimental.pallas import tpu as pltpu

LANE = 128


def _round_up(a, b):
    return ((a + b - 1) // b) * b


def grid_seg_kernel(x_ref, w_ref, b_ref, out_ref, *, num_classes):
    # x_ref:   (C1, tm)       pixels on the lane axis (lane-dense)
    # w_ref:   (NCLS+1, C1)   folded effective weights (resident, constant index map)
    # b_ref:   (NCLS+1, 1)    folded effective bias (f32)
    # out_ref: (NCLS+1, tm)   rows [0, NCLS) = class logits, row NCLS = sigmoid(conf)
    #
    # If a v7x bundle dump ever shows MXU weight re-staging scaling with tm/128, consider
    # holding the tiny folded weight stationary via pltpu.matmul_push_rhs; on v5e/v6e the
    # HBM window fully hides it.
    y = jnp.dot(w_ref[...], x_ref[...], preferred_element_type=jnp.float32) + b_ref[...]
    row_ids = jax.lax.broadcasted_iota(jnp.int32, y.shape, 0)
    # Single dot -> add -> where -> store chain; sigmoid on the class rows is dead work on
    # the EUP slot (free) and keeps the store unmasked and full-tile.
    out_ref[...] = jnp.where(row_ids == num_classes,
                             jax.nn.sigmoid(y), y).astype(out_ref.dtype)


def fold_params(params):
    """Fold conv1->conv2 of each branch into one effective weight/bias and concat branches."""
    (w1c, b1c, w2c, b2c, w1f, b1f, w2f, b2f) = params
    assert w2f.shape[-1] == 1, "GridSeg assumes exactly one confidence channel"
    w_cls = w1c @ w2c                # (C1, NCLS)
    b_cls = b1c @ w2c + b2c          # (1, NCLS)
    w_cnf = w1f @ w2f                # (C1, 1)
    b_cnf = b1f @ w2f + b2f          # (1, 1)
    w_eff = jnp.concatenate([w_cls, w_cnf], axis=1)   # (C1, NCLS+1) — class first, conf last
    b_eff = jnp.concatenate([b_cls, b_cnf], axis=1)   # (1, NCLS+1)
    return w_eff.T, b_eff.T                           # (NCLS+1, C1), (NCLS+1, 1)


def grid_seg_forward(x_nchw, params, *, tm=16384, out_dtype=None,
                     x_tile_budget_bytes=4 << 20):
    """x_nchw: (N, C1, H, W), float32 or bfloat16. Returns (N, num_classes + 1, H, W)."""
    w_eff_t, b_eff_t = fold_params(params)
    N, C1, H, W = x_nchw.shape
    NCLS1 = w_eff_t.shape[0]                      # num_classes + 1
    num_classes = NCLS1 - 1
    HW = H * W
    out_dtype = x_nchw.dtype if out_dtype is None else out_dtype

    in_bytes = jnp.dtype(x_nchw.dtype).itemsize
    out_bytes = jnp.dtype(out_dtype).itemsize

    # Pixel axis padded only to a lane multiple (no-op for e.g. 144*144 = 162*128).
    HW128 = _round_up(HW, LANE)

    # Lane-aligned tile: capped by request, by total pixels, and by a VMEM budget on the
    # x tile so large C1 (real module: 1024) keeps double-buffered footprint well under the
    # scoped-VMEM default on v5e/v6e/v7x.
    cap_budget = max(LANE, ((x_tile_budget_bytes // (C1 * in_bytes)) // LANE) * LANE)
    tm_eff = max(LANE, (min(tm, HW128, cap_budget) // LANE) * LANE)

    # NCHW reshapes directly to (N, C1, HW): channels second, pixels last — no transpose.
    x3d = x_nchw.reshape(N, C1, HW)
    if HW128 != HW:
        x3d = jnp.pad(x3d, ((0, 0), (0, 0), (0, HW128 - HW)))

    # Operands in the streaming dtype; bias stays f32 (added to the f32 accumulator).
    w_eff_t = w_eff_t.astype(x_nchw.dtype)
    b_eff_t = b_eff_t.astype(jnp.float32)

    kernel = functools.partial(grid_seg_kernel, num_classes=num_classes)

    cost = pl.CostEstimate(
        flops=2 * N * HW128 * C1 * NCLS1,
        transcendentals=N * HW128,
        bytes_accessed=N * HW128 * (C1 * in_bytes + NCLS1 * out_bytes),
    )

    grid = (N, pl.cdiv(HW128, tm_eff))   # ragged last tile handled by Pallas boundary masking

    out3d = pl.pallas_call(
        kernel,
        out_shape=jax.ShapeDtypeStruct((N, NCLS1, HW128), out_dtype),
        grid_spec=pltpu.PrefetchScalarGridSpec(
            num_scalar_prefetch=0,
            grid=grid,
            in_specs=[
                pl.BlockSpec((pl.Squeezed(), C1, tm_eff), lambda n, i: (n, 0, i)),
                pl.BlockSpec((NCLS1, C1), lambda n, i: (0, 0)),   # resident weights
                pl.BlockSpec((NCLS1, 1), lambda n, i: (0, 0)),    # resident bias
            ],
            out_specs=pl.BlockSpec((pl.Squeezed(), NCLS1, tm_eff),
                                   lambda n, i: (n, 0, i)),
        ),
        compiler_params=pltpu.CompilerParams(
            dimension_semantics=("parallel", "parallel")),
        cost_estimate=cost,
    )(x3d, w_eff_t, b_eff_t)

    if HW128 != HW:
        out3d = out3d[:, :, :HW]
    # (N, NCLS+1, HW) -> (N, NCLS+1, H, W): pure reshape, no transpose.
    return out3d.reshape(N, NCLS1, H, W)


def init_params(key, num_1, num_2, num_classes):
    ks = jax.random.split(key, 8)
    s1 = 1.0 / jnp.sqrt(num_1)
    s2 = 1.0 / jnp.sqrt(num_2)
    # Conv2d(cin, cout, 1) weight (cout, cin, 1, 1) stored here as (cin, cout) for matmul.
    w1c = jax.random.uniform(ks[0], (num_1, num_2), jnp.float32, -s1, s1)
    b1c = jax.random.uniform(ks[1], (1, num_2), jnp.float32, -s1, s1)
    w2c = jax.random.uniform(ks[2], (num_2, num_classes), jnp.float32, -s2, s2)
    b2c = jax.random.uniform(ks[3], (1, num_classes), jnp.float32, -s2, s2)
    w1f = jax.random.uniform(ks[4], (num_1, num_2), jnp.float32, -s1, s1)
    b1f = jax.random.uniform(ks[5], (1, num_2), jnp.float32, -s1, s1)
    w2f = jax.random.uniform(ks[6], (num_2, 1), jnp.float32, -s2, s2)
    b2f = jax.random.uniform(ks[7], (1, 1), jnp.float32, -s2, s2)
    return (w1c, b1c, w2c, b2c, w1f, b1f, w2f, b2f)


def reference_forward(x_nchw, params):
    """Unfused reference: exactly the module's conv->conv (+sigmoid) per branch, then concat."""
    (w1c, b1c, w2c, b2c, w1f, b1f, w2f, b2f) = params
    N, C1, H, W = x_nchw.shape
    x2d = jnp.transpose(x_nchw, (0, 2, 3, 1)).reshape(-1, C1).astype(jnp.float32)
    cls_out = (x2d @ w1c + b1c) @ w2c + b2c
    cnf_out = jax.nn.sigmoid((x2d @ w1f + b1f) @ w2f + b2f)
    out2d = jnp.concatenate([cls_out, cnf_out], axis=-1)
    return jnp.transpose(out2d.reshape(N, H, W, -1), (0, 3, 1, 2))


if __name__ == "__main__":
    # Small shapes consistent with the module (num_1 -> num_2 -> {num_classes, 1}).
    num_1, num_2, num_classes = 32, 64, 7
    N, H, W = 2, 8, 8

    key = jax.random.PRNGKey(0)
    kx, kp = jax.random.split(key)
    x = jax.random.normal(kx, (N, num_1, H, W), jnp.float32)
    params = init_params(kp, num_1, num_2, num_classes)

    out = grid_seg_forward(x, params)
    out = jax.block_until_ready(out)

    ref = reference_forward(x, params)
    assert out.shape == (N, num_classes + 1, H, W), out.shape
    # Branch folding is algebraically exact; tolerance covers fp32 reassociation.
    assert jnp.allclose(out, ref, atol=2e-4, rtol=2e-4), "mismatch vs reference"

    print("KERNEL_OK")
</pallas_src>

<mosaic_0001>
module attributes {stable_mosaic.version = 11 : i64} {
  func.func @grid_seg_kernel(%arg0: i32, %arg1: i32, %arg2: memref<1x32x128xf32, #tpu.memory_space<vmem>>, %arg3: memref<8x32xf32, #tpu.memory_space<vmem>>, %arg4: memref<8x1xf32, #tpu.memory_space<vmem>>, %arg5: memref<1x8x128xf32, #tpu.memory_space<vmem>>) attributes {dimension_semantics = [#tpu.dimension_semantics<parallel>, #tpu.dimension_semantics<parallel>], iteration_bounds = array<i64: 2, 1>, scalar_prefetch = 0 : i64, scratch_operands = 0 : i64, tpu.core_type = #tpu.core_type<tc>, window_params = [{transform_indices = @transform_0, window_bounds = array<i64: 1, 32, 128>}, {pipeline_mode = #tpu.pipeline_mode<synchronous>, transform_indices = @transform_1, window_bounds = array<i64: 8, 32>}, {pipeline_mode = #tpu.pipeline_mode<synchronous>, transform_indices = @transform_2, window_bounds = array<i64: 8, 1>}, {transform_indices = @transform_3, window_bounds = array<i64: 1, 8, 128>}]} {
    %c0 = arith.constant 0 : index
    %c0_0 = arith.constant 0 : index
    %0 = vector.load %arg3[%c0, %c0_0] : memref<8x32xf32, #tpu.memory_space<vmem>>, vector<8x32xf32>
    %c0_1 = arith.constant 0 : index
    %c0_2 = arith.constant 0 : index
    %c0_3 = arith.constant 0 : index
    %1 = vector.load %arg2[%c0_1, %c0_2, %c0_3] : memref<1x32x128xf32, #tpu.memory_space<vmem>>, vector<1x32x128xf32>
    %2 = vector.shape_cast %1 : vector<1x32x128xf32> to vector<32x128xf32>
    %cst = arith.constant dense<0.000000e+00> : vector<8x128xf32>
    %3 = tpu.matmul %0, %2, %cst {dimension_numbers = #tpu.dot_dimension_numbers<[1], [0], [0], [1], [0, 0, 1, 1], [], []>} : vector<8x32xf32>, vector<32x128xf32>, vector<8x128xf32> -> vector<8x128xf32>
    %c0_4 = arith.constant 0 : index
    %c0_5 = arith.constant 0 : index
    %4 = vector.load %arg4[%c0_4, %c0_5] : memref<8x1xf32, #tpu.memory_space<vmem>>, vector<8x1xf32>
    %5 = vector.broadcast %4 : vector<8x1xf32> to vector<8x128xf32>
    %6 = arith.addf %3, %5 : vector<8x128xf32>
    %7 = tpu.iota {dimensions = array<i32: 0>} : vector<8x128xi32>
    %c7_i32 = arith.constant 7 : i32
    %8 = vector.broadcast %c7_i32 : i32 to vector<8x128xi32>
    %9 = arith.cmpi eq, %7, %8 : vector<8x128xi32>
    %10 = arith.negf %6 : vector<8x128xf32>
    %11 = math.exp %10 : vector<8x128xf32>
    %cst_6 = arith.constant 1.000000e+00 : f32
    %12 = vector.broadcast %cst_6 : f32 to vector<8x128xf32>
    %13 = arith.addf %12, %11 : vector<8x128xf32>
    %14 = arith.divf %12, %13 : vector<8x128xf32>
    %15 = arith.select %9, %14, %6 : vector<8x128xi1>, vector<8x128xf32>
    %c0_7 = arith.constant 0 : index
    %c0_8 = arith.constant 0 : index
    %c0_9 = arith.constant 0 : index
    %16 = vector.load %arg5[%c0_7, %c0_8, %c0_9] : memref<1x8x128xf32, #tpu.memory_space<vmem>>, vector<1x8x128xf32>
    %17 = vector.shape_cast %16 : vector<1x8x128xf32> to vector<8x128xf32>
    %18 = vector.shape_cast %15 : vector<8x128xf32> to vector<1x8x128xf32>
    tpu.vector_store %arg5[%c0_7, %c0_8, %c0_9], %18 {strides = array<i32>} : memref<1x8x128xf32, #tpu.memory_space<vmem>>, vector<1x8x128xf32>,
    return
  }
  func.func @transform_0(%arg0: i32, %arg1: i32) -> (i32, i32, i32) {
    %c0_i32 = arith.constant 0 : i32
    %c0_i32_0 = arith.constant 0 : i32
    return %arg0, %c0_i32, %arg1 : i32, i32, i32
  }
  func.func @transform_1(%arg0: i32, %arg1: i32) -> (i32, i32) {
    %c0_i32 = arith.constant 0 : i32
    %c0_i32_0 = arith.constant 0 : i32
    %c0_i32_1 = arith.constant 0 : i32
    return %c0_i32, %c0_i32_0 : i32, i32
  }
  func.func @transform_2(%arg0: i32, %arg1: i32) -> (i32, i32) {
    %c0_i32 = arith.constant 0 : i32
    %c0_i32_0 = arith.constant 0 : i32
    %c0_i32_1 = arith.constant 0 : i32
    return %c0_i32, %c0_i32_0 : i32, i32
  }
  func.func @transform_3(%arg0: i32, %arg1: i32) -> (i32, i32, i32) {
    %c0_i32 = arith.constant 0 : i32
    %c0_i32_0 = arith.constant 0 : i32
    return %arg0, %c0_i32, %arg1 : i32, i32, i32
  }
}

</mosaic_0001>

<bundles_post_ra>
// kernel: tpu_custom_call.1
= control target key start
LH: loop header
LB: loop body
LE: loop exit
PB: predicated region body
PF: predicated region fallthrough
CT: control target
= control target key end

     0   :  { %8 = vsyncpa [#allocation3], 0  ;;  %s785_s0 = inlined_call_operand.hbm [shape: f32[2,32,128], index: 0, kind: input, shape index: {}]   ;;  %s786_s1 = inlined_call_operand.vmem [shape: f32[8,32], index: 1, kind: input, shape index: {}]   ;;  %s787_s2 = inlined_call_operand.vmem [shape: f32[8,1], index: 2, kind: input, shape index: {}]   ;;  %s788_s3 = inlined_call_operand.hbm [shape: f32[2,8,128], index: 3, kind: output, shape index: {}]  }
   0x1   :  { %10 = vsyncpa [#allocation3 + $0x1], 0 }
   0x2   :  { %11 = vsyncpa [#allocation4], 0 }
   0x3   :  { %13 = vsyncpa [#allocation4 + $0x1], 0  ;;  %s640_s12 = smov 0   ;;  %s642_s13 = smov 0  }
   0x4   :  { %s644_s14 = smov 0   ;;  %s646_s15 = smov 0  }
   0x5   :  { %s648_s16 = smov 0   ;;  %s650_s17 = smov 0  }
   0x6 LB: > { %s398_s18 = sadd.s32 4294967295, %s611_s17   ;;  %s399_s19 = sadd.s32 4294967294, %s611_s17   ;;  %s611_s17 = sphi %s650_s17, %s19_s17   ;;  %s607_s16 = sphi %s648_s16, %s799_s16   ;;  %s603_s15 = sphi %s646_s15, %s798_s15   ;;  %s599_s14 = sphi %s644_s14, %s797_s14   ;;  %s595_s13 = sphi %s642_s13, %s796_s13   ;;  %s591_s12 = sphi %s640_s12, %s795_s12  }
   0x7   : > { %s31_s20 = sadd.s32 1, %s607_s16  ;;  %s40_s21 = sadd.s32 1, %s599_s14 }
   0x8   : > { %p33_p0 = scmp.ge.s32.totalorder %s31_s20, 2  ;;  %p47_p1 = scmp.ne.s32.totalorder %s599_s14, %s595_s13 }
   0x9   : > { %p48_p2 = scmp.eq.s32.totalorder %s611_s17, 0  ;;  %p53_p3 = scmp.ne.s32.totalorder %s595_s13, %s591_s12 }
   0xa   : > { %s801_s20 = smov (%p33_p0, %s31_s20), 0  ;;  %p54_p5 = scmp.eq.s32.totalorder %s398_s18, 0 }
   0xb   : > { %p681_p4 = por %p48_p2, %p47_p1  ;;  %s35_s23 = ssub.s32 %s607_s16, %s801_s20 }
   0xc   : > { %p121_p6 = scmp.eq.s32.totalorder %s398_s18, 1  ;;  %p38_p7 = scmp.eq.s32.totalorder %s35_s23, 0 }
   0xd   : > { %p687_p8 = por %p54_p5, %p53_p3  ;;  %p127_p10 = scmp.eq.s32.totalorder %s399_s19, 1 }
   0xe   : > { %p691_p9 = por %p121_p6, %p47_p1  ;;  %p443_p13 = scmp.lt.s32.totalorder %s611_s17, 2 }
   0xf   : > { %s696_s26 = scalar_select %p38_p7, %s599_s14, %s40_s21  }
  0x10   : > { %p698_p11 = por %p127_p10, %p53_p3  ;;  %s153_s28 = sand.u32 1, %s599_s14  }
  0x11   : > { %s402_s29 = sshll.u32 %s153_s28, 5  ;;  %s414_s30 = sshll.u32 %s607_s16, 9 }
  0x12   : > { %s164_s6 = scalar_lea.hbm %s785_s0, %s414_s30  ;;  %s157_s7 = scalar_lea.vmem [#allocation2], %s402_s29 }
  0x13   : > { %s165_s8 = sshll.u32 %s157_s7, 4  ;;  %p711_p0 = pnand %p443_p13, %p681_p4  ;;  %s166_s8 = int_to_ptr.vmem [resolvable:$true] %s165_s8 }
  0x14   : > { %p405_p1 = scmp.ge.s32.totalorder %s611_s17, 1  ;;  %s154_s10 = scalar_lea.sflag [#allocation3], %s153_s28 }
  0x15   : > { %p505_p2 = pneg %p711_p0  ;;  %s516_s11 = scalar_lea.vmem %s166_s8, 512 }
  0x16   : > { %p517_p3 = scmp.ne.s32.totalorder %s166_s8, %s516_s11  ;;  %s613_s18 = smov [#allocation2]  }
  0x17   : > { %s521_s19 = sshll.u32 %s613_s18, 4  ;;  %s522_s19 = int_to_ptr.vmem [resolvable:$false] %s521_s19 }
  0x18   : > { %p519_p5 = pnand %p517_p3, %p505_p2  ;;  %s523_s21 = scalar_lea.vmem %s522_s19, 1024 }
  0x19   : > { %p524_p7 = scmp.lt.s32.totalorder %s166_s8, %s522_s19  ;;  %p525_p10 = scmp.lt.s32.totalorder %s523_s21, %s516_s11 }
  0x1a   : > { %p520_p6 = pneg %p519_p5 }
  0x1b   : > { %p526_p12 = por %p525_p10, %p524_p7 }
  0x1d   : > { %p527_p4 = pnand %p526_p12, %p520_p6 }
  0x1f   : > { %530 = shalt.err (!%p527_p4)
}
  0x20   : > { %s614_s22 = smov 128   ;;  %s615_s23 = smov 8  }
  0x21   : > { %438 = dma.hbm_to_vmem [thread:$0]  (!%p711_p0), %s164_s6, 512, %s166_s8, %s154_s10, %s614_s22, %s614_s22, %s615_s23  }
  0x22   : > { %p173_p13 = scmp.lt.s32.totalorder %s611_s17, 3 }
  0x24   : > { %p174_p2 = pnand %p405_p1, %p173_p13 }
  0x25   : > { %s724_s28 = sand.u32 (!%p174_p2), 1, %s595_s13  }
  0x26   : > { %177 = sbr.rel (%p174_p2) target bundleno = 294 (0x126), region = 32  ;;  %s406_s29 = sshll.u32 (!%p174_p2), %s724_s28, 5 }
  0x27   : > { %s180_s30 = scalar_lea.sflag (!%p174_p2), [#allocation3], %s724_s28  ;;  %s183_s4 = scalar_lea.vmem (!%p174_p2), [#allocation2], %s406_s29 }
  0x2b   : > { %582 = dma.done.wait (%p687_p8), %s180_s30, 512  }
  0x2c   : > { %584 = vsyncadd (%p687_p8), %s180_s30, 4294966784  ;;  %v616_v0 = vmov 0.0   ;;  %vm617_vm0 = vmmov 0   ;;  %v618_v1 = vmov 0   ;;  %v210_v2 = vld [vmem:[%s183_s4 + $0x18] sm:$0xff]  ;;  %v209_v3 = vld [vmem:[%s183_s4 + $0x10] sm:$0xff]  ;;  %v291_v15 = vlaneseq }
  0x2d   : > { %420 = vmatprep.subr.mxu0 %v616_v0  ;;  %428 = vmatprep.mubr.msk.f32.mxu0 %vm617_vm0, %v616_v0  ;;  %v211_v4 = vld [vmem:[%s787_s2] sm:$0xff]  ;;  %v208_v5 = vld [vmem:[%s183_s4 + $0x8] sm:$0xff]  ;;  %vm217_vm1 = vcmask 261120   ;;  %s407_s8 = sshll.u32 %s724_s28, 3  ;;  %s411_s9 = sshll.u32 %s603_s15, 7 }
  0x2e   : > { %498 = vset.pattern.permute.xlu0 %v618_v1  ;;  %421 = vmatpush3.msra.mxu0 %v210_v2  ;;  %v207_v6 = vld [vmem:[%s183_s4] sm:$0xff]  ;;  %v292_v16 = vshrl.u32 %v291_v15, 7  ;;  %s205_s10 = scalar_lea.vmem [#allocation5], %s407_s8  ;;  %s743_s21 = scalar_lea.hbm %s788_s3, %s411_s9 }
  0x2f   : > { %422 = vmatprep.subr.mxu0 %v616_v0  ;;  %214 = vperm.xlu0 %498, %v211_v4   ;;  %v206_v7 = vld [vmem:[%s786_s1] sm:$0xff]  ;;  %s317_s11 = sshll.u32 %s205_s10, 4  ;;  %s303_s22 = scalar_lea.sflag [#allocation4], %s724_s28  ;;  %s318_s11 = int_to_ptr.vmem [resolvable:$true] %s317_s11 }
  0x30   : > { %423 = vmatpush3.msra.mxu0 %v209_v3  ;;  %vm293_vm2 = vcmp.eq.s32.totalorder %v292_v16, 7  ;;  %s531_s23 = scalar_lea.vmem %s318_s11, 128  ;;  %s619_s29 = smov [#allocation5]  }
  0x31   : > { %424 = vmatprep.subr.mxu0 %v616_v0  ;;  %p532_p8 = scmp.ne.s32.totalorder %s318_s11, %s531_s23  ;;  %s535_s15 = sshll.u32 %s619_s29, 4  ;;  %s536_s15 = int_to_ptr.vmem [resolvable:$false] %s535_s15 }
  0x32   : > { %425 = vmatpush3.msra.mxu0 %v208_v5  ;;  %s537_s30 = scalar_lea.vmem %s536_s15, 256  ;;  %p538_p1 = scmp.lt.s32.totalorder %s318_s11, %s536_s15 }
  0x33   : > { %426 = vmatprep.subr.mxu0 %v616_v0  ;;  %p533_p12 = pnand %p532_p8, %p691_p9  ;;  %p539_p3 = scmp.lt.s32.totalorder %s537_s30, %s531_s23 }
  0x34   : > { %427 = vmatpush3.msra.mxu0 %v207_v6 }
  0x35   : > { %429 = vmatmul.mubr.msk.f32.vlgmr.msra.gmra.mxu0 %vm217_vm1, %v206_v7  ;;  %p534_p0 = pneg %p533_p12  ;;  %p540_p5 = por %p539_p3, %p538_p1 }
  0x37   : > { %p541_p6 = pnand %p540_p5, %p534_p0 }
  0xaa   : > { %v215_v8 = vpop.permute.xlu0 %214 }
  0xf5   : > { %v287_v9 = vpop.f32.mrf.mxu0 }
  0xf6   : > { %v288_v10 = vadd.f32 %v287_v9, %v215_v8 }
  0xf7   : > { %v430_v11 = vpop.f32.mrf.mxu0 }
  0xf8   : > { %v409_v12 = vmul.f32 -1.442695, %v288_v10 }
  0xfa   : > { %499 = vpow2.f32 %v409_v12 }
 0x107   : > { %v500_v13 = vpop.eup %499 }
 0x108   : > { %v297_v14 = vadd.f32 1.0, %v500_v13 }
 0x10a   : > { %501 = vrcp.f32 %v297_v14 }
 0x117   : > { %v502_v17 = vpop.eup %501 }
 0x118   : > { %v300_v18 = vsel %vm293_vm2, %v502_v17, %v288_v10 }
 0x119   : > { %301 = vst [vmem:[%s205_s10] sm:$0xff] %v300_v18 }
 0x11a   : > { %544 = shalt.err (!%p541_p6)
}
 0x11b   : > { %s545_s4 = scalar_lea.hbm %s743_s21, 128  ;;  %s549_s6 = scalar_lea.hbm %s788_s3, 256 }
 0x11c   : > { %p546_p7 = scmp.ne.s32.totalorder %s743_s21, %s545_s4  ;;  %p550_p13 = scmp.lt.s32.totalorder %s743_s21, %s788_s3 }
 0x11d   : > { %p551_p2 = scmp.lt.s32.totalorder %s549_s6, %s545_s4 }
 0x11e   : > { %p547_p10 = pnand %p546_p7, %p691_p9 }
 0x11f   : > { %p552_p8 = por %p551_p2, %p550_p13 }
 0x120   : > { %p548_p4 = pneg %p547_p10 }
 0x122   : > { %p553_p12 = pnand %p552_p8, %p548_p4 }
 0x124   : > { %556 = shalt.err (!%p553_p12)
}
 0x125   : > { %433 = dma.vmem_to_hbm [thread:$0]  (%p691_p9), %s318_s11, 128, %s743_s21, %s303_s22  }
 0x126 PF: > { %s329_s8 = sand.u32 1, %s591_s12   ;;  %p794_p0 = scmp.ge.s32.totalorder %s611_s17, 2 }
 0x127   : > { %s330_s9 = scalar_lea.sflag [#allocation4], %s329_s8 }
 0x128   : > { %p440_p1 = pnand %p794_p0, %p698_p11 }
 0x12a   : > { %p441_p3 = pneg %p440_p1 }
 0x12c   : > { %586 = dma.done.wait (%p441_p3), %s330_s9, 128  }
 0x12d   : > { %588 = vsyncadd (%p441_p3), %s330_s9, 4294967168  ;;  %s19_s17 = sadd.s32 1, %s611_s17   ;;  %s795_s12 = smov %s595_s13 }
 0x12e   : > { %p16_p5 = scmp.ge.s32.totalorder %s19_s17, 4   ;;  %s796_s13 = smov %s599_s14 }
 0x12f   : > { %s797_s14 = smov %s696_s26  ;;  %s798_s15 = smov %s607_s16 }
 0x130   : > { %s799_s16 = smov %s801_s20  ;;  %18 = sbr.rel (!%p16_p5) target bundleno = 6 (0x6), region = 77 }
 0x135   :  { %335 = vsyncpa [#allocation3], 1 }
 0x136   :  { %337 = vsyncpa [#allocation3 + $0x1], 1 }
 0x137   :  { %338 = vsyncpa [#allocation4], 1 }
 0x138   :  { %340 = vsyncpa [#allocation4 + $0x1], 1 }

</bundles_post_ra>
